<compile_context>
chip_gen: v6e
topology: v6e:2x2x1
jax: 0.10.0
libtpu: 0.0.40
codegen_flags: <defaults>
</compile_context>

<pallas_src>
import jax
import jax.numpy as jnp
import numpy as np
from jax.experimental import pallas as pl
from jax.experimental.pallas import tpu as pltpu


def _fused_heads_kernel(x_ref, w_ref, b_ref, o_ref):
    # x_ref: (TB, H) bf16   w_ref: (H, TN) bf16   b_ref: (1, TN) f32
    # o_ref: (TB, TN) f32
    acc = jnp.dot(x_ref[...], w_ref[...], preferred_element_type=jnp.float32)
    o_ref[...] = (acc + b_ref[...]).astype(o_ref.dtype)


def efficient_module_list_forward(x, w_cols, b_row, *, tb=256, tn=256,
                                  compute_dtype=jnp.bfloat16):
    """Apply all linear heads to the same input x with one fused, tiled matmul.

    x:      (B, H)        — activations (any float dtype; cast to bf16)
    w_cols: (H, N_total)  — head n's weight occupies its column block
                            (caller builds column blocks consistently for
                             heads with out_dim > 1)
    b_row:  (1, N_total)  — concatenated biases
    Returns the fused (B, N_total) float32 array.  Consumers index per-head
    column blocks directly instead of splitting into N width-1 arrays.
    """
    B, H = x.shape
    Hw, N = w_cols.shape
    assert Hw == H and b_row.shape == (1, N)

    # Batch tile: multiple of 8 sublanes, or the full B if it already fits.
    TB = B if B <= tb else tb
    # Head tile: multiple of 128 lanes when tiled, or the full N if small.
    TN = N if N <= tn else tn

    grid = (pl.cdiv(B, TB), pl.cdiv(N, TN))

    x_c = x.astype(compute_dtype)
    w_c = w_cols.astype(compute_dtype)
    b_c = b_row.astype(jnp.float32)

    # Advisory cost for XLA's scheduler (memory-bound: AI ~ N/2 flops/byte).
    bytes_accessed = (x_c.size * x_c.dtype.itemsize
                      + w_c.size * w_c.dtype.itemsize
                      + b_c.size * 4 + B * N * 4)
    cost = pl.CostEstimate(flops=2 * B * H * N, transcendentals=0,
                           bytes_accessed=bytes_accessed)

    # VMEM budget: double-buffered x / w / b input tiles + double-buffered
    # f32 output tile, plus margin.  Clamp so it is valid on v7x (64 MiB
    # physical) while still raising the default when tiles are large.
    itm = jnp.dtype(compute_dtype).itemsize
    vmem_bytes = 2 * (TB * H * itm + H * TN * itm + TN * 4 + TB * TN * 4)
    vmem_bytes = int(min(max(vmem_bytes + (4 << 20), 8 << 20), 48 << 20))

    out = pl.pallas_call(
        _fused_heads_kernel,
        out_shape=jax.ShapeDtypeStruct((B, N), jnp.float32),
        grid=grid,
        in_specs=[
            pl.BlockSpec((TB, H), lambda i, j: (i, 0)),   # x resident across head axis
            pl.BlockSpec((H, TN), lambda i, j: (0, j)),
            pl.BlockSpec((1, TN), lambda i, j: (0, j)),
        ],
        out_specs=pl.BlockSpec((TB, TN), lambda i, j: (i, j)),
        compiler_params=pltpu.CompilerParams(
            dimension_semantics=("parallel", "parallel"),
            vmem_limit_bytes=vmem_bytes),
        cost_estimate=cost,
    )(x_c, w_c, b_c)
    return out


if __name__ == "__main__":
    # Small deterministic setup mirroring the binary-heads wrapper:
    # 4 heads of nn.Linear(hidden=32, 1), batch = 8.
    B, H, O, N_HEADS = 8, 32, 1, 4

    key = jax.random.PRNGKey(0)
    kx, kw, kb = jax.random.split(key, 3)

    x = jax.random.normal(kx, (B, H), dtype=jnp.float32)
    # Synthetic per-head parameters in the layout a torch ModuleList implies.
    w_stack = jax.random.normal(kw, (N_HEADS, H, O), dtype=jnp.float32) * 0.05
    b_stack = jax.random.normal(kb, (N_HEADS, 1, O), dtype=jnp.float32) * 0.05

    # One-time repack into the fused lane-dense layout: head n -> column block n.
    w_cols = jnp.transpose(w_stack[:, :, 0])        # (H, N_HEADS)
    b_row = b_stack.reshape(1, N_HEADS)             # (1, N_HEADS)
    head_out_dims = [O] * N_HEADS
    head_offsets = [int(o) for o in np.cumsum([0] + head_out_dims[:-1])]

    fused = efficient_module_list_forward(x, w_cols, b_row)
    fused = jax.block_until_ready(fused)
    assert fused.shape == (B, sum(head_out_dims)), fused.shape

    # Pure-JAX reference of the original per-head forward, fused for comparison
    # (no width-1 splits on the kernel output path).
    ref_list = [x @ w_stack[n] + b_stack[n] for n in range(N_HEADS)]
    ref_fused = jnp.concatenate(ref_list, axis=1)
    # bf16 inputs / f32 accumulation -> loose-ish tolerance vs f32 reference.
    assert jnp.allclose(fused, ref_fused, atol=2e-2, rtol=2e-2)

    # Consumer-side per-head access (cheap column slices, done only where a
    # head result is actually needed).
    for n, off in enumerate(head_offsets):
        head_n = fused[:, off:off + head_out_dims[n]]
        assert head_n.shape == (B, head_out_dims[n])
        assert jnp.allclose(head_n, ref_list[n], atol=2e-2, rtol=2e-2)

    print("KERNEL_OK")
</pallas_src>

<mosaic_0001>
module attributes {stable_mosaic.version = 11 : i64} {
  func.func @_fused_heads_kernel(%arg0: i32, %arg1: i32, %arg2: memref<8x32xbf16, #tpu.memory_space<vmem>>, %arg3: memref<32x4xbf16, #tpu.memory_space<vmem>>, %arg4: memref<1x4xf32, #tpu.memory_space<vmem>>, %arg5: memref<8x4xf32, #tpu.memory_space<vmem>>) attributes {dimension_semantics = [#tpu.dimension_semantics<parallel>, #tpu.dimension_semantics<parallel>], iteration_bounds = array<i64: 1, 1>, scalar_prefetch = 0 : i64, scratch_operands = 0 : i64, tpu.core_type = #tpu.core_type<tc>, window_params = [{transform_indices = @transform_0, window_bounds = array<i64: 8, 32>}, {transform_indices = @transform_1, window_bounds = array<i64: 32, 4>}, {transform_indices = @transform_2, window_bounds = array<i64: 1, 4>}, {transform_indices = @transform_3, window_bounds = array<i64: 8, 4>}]} {
    %c0 = arith.constant 0 : index
    %c0_0 = arith.constant 0 : index
    %0 = vector.load %arg2[%c0, %c0_0] : memref<8x32xbf16, #tpu.memory_space<vmem>>, vector<8x32xbf16>
    %c0_1 = arith.constant 0 : index
    %c0_2 = arith.constant 0 : index
    %1 = vector.load %arg3[%c0_1, %c0_2] : memref<32x4xbf16, #tpu.memory_space<vmem>>, vector<32x4xbf16>
    %cst = arith.constant dense<0.000000e+00> : vector<8x4xf32>
    %2 = tpu.matmul %0, %1, %cst {dimension_numbers = #tpu.dot_dimension_numbers<[1], [0], [0], [1], [0, 0, 1, 1], [], []>} : vector<8x32xbf16>, vector<32x4xbf16>, vector<8x4xf32> -> vector<8x4xf32>
    %c0_3 = arith.constant 0 : index
    %c0_4 = arith.constant 0 : index
    %3 = vector.load %arg4[%c0_3, %c0_4] : memref<1x4xf32, #tpu.memory_space<vmem>>, vector<1x4xf32>
    %4 = vector.broadcast %3 : vector<1x4xf32> to vector<8x4xf32>
    %5 = arith.addf %2, %4 : vector<8x4xf32>
    %c0_5 = arith.constant 0 : index
    %c0_6 = arith.constant 0 : index
    %6 = vector.load %arg5[%c0_5, %c0_6] : memref<8x4xf32, #tpu.memory_space<vmem>>, vector<8x4xf32>
    tpu.vector_store %arg5[%c0_5, %c0_6], %5 {strides = array<i32>} : memref<8x4xf32, #tpu.memory_space<vmem>>, vector<8x4xf32>,
    return
  }
  func.func @transform_0(%arg0: i32, %arg1: i32) -> (i32, i32) {
    %c0_i32 = arith.constant 0 : i32
    %c0_i32_0 = arith.constant 0 : i32
    return %arg0, %c0_i32 : i32, i32
  }
  func.func @transform_1(%arg0: i32, %arg1: i32) -> (i32, i32) {
    %c0_i32 = arith.constant 0 : i32
    %c0_i32_0 = arith.constant 0 : i32
    return %c0_i32, %arg1 : i32, i32
  }
  func.func @transform_2(%arg0: i32, %arg1: i32) -> (i32, i32) {
    %c0_i32 = arith.constant 0 : i32
    %c0_i32_0 = arith.constant 0 : i32
    return %c0_i32, %arg1 : i32, i32
  }
  func.func @transform_3(%arg0: i32, %arg1: i32) -> (i32, i32) {
    %c0_i32 = arith.constant 0 : i32
    return %arg0, %arg1 : i32, i32
  }
}

</mosaic_0001>

<bundles_post_ra>
// kernel: tpu_custom_call.1
= control target key start
LH: loop header
LB: loop body
LE: loop exit
PB: predicated region body
PF: predicated region fallthrough
CT: control target
= control target key end

     0   :  { %v108_v0 = vmov 0.0   ;;  %vm109_vm0 = vmmov 0   ;;  %vm39_vm1 = vcmask 261120   ;;  %vm83_vm2 = vcmask 31744   ;;  %s145_s1 = inlined_call_operand.vmem [shape: bf16[32,4], index: 1, kind: input, shape index: {}]   ;;  %s146_s0 = inlined_call_operand.vmem [shape: bf16[8,32], index: 0, kind: input, shape index: {}]   ;;  %s147_s2 = inlined_call_operand.vmem [shape: f32[1,4], index: 2, kind: input, shape index: {}]   ;;  %s148_s3 = inlined_call_operand.vmem [shape: f32[8,4], index: 3, kind: output, shape index: {}]  }
   0x1   :  { %96 = vmatprep.subr.bf16.mxu0 %v108_v0  ;;  %v106_v1 = vld [vmem:[%s145_s1 + $0x8] sm:$0xff]   ;;  %100 = vmatprep.mubr.msk.bf16.mxu0 %vm109_vm0, %v108_v0  ;;  %v107_v2 = vld [vmem:[%s145_s1] sm:$0xff]  }
   0x2   :  { %97 = vmatpush3.bf16.msra.mxu0 %v106_v1  ;;  %v15_v3 = vld [vmem:[%s146_s0] sm:$0xf] }
   0x3   :  { %98 = vmatprep.subr.bf16.mxu0 %v108_v0  ;;  %v89_v4 = vld [vmem:[%s147_s2] ss:$0 sm:$0xff] }
   0x6   :  { %99 = vmatpush3.bf16.msra.mxu0 %v107_v2 }
   0x9   :  { %101 = vmatmul.mubr.msk.bf16.vlgmr.msra.gmra.mxu0 %vm39_vm1, %v15_v3 }
  0xc9   :  { %v77_v5 = vpop.f32.mrf.mxu0 }
  0xca   :  { %v78_v6 = vadd.f32 %v89_v4, %v77_v5 }
  0xcb   :  { %v102_v7 = vpop.f32.mrf.mxu0 }
  0xcc   :  { %84 = vst.msk [vmem:[%s148_s3] sm:$0xff] %vm83_vm2, %v78_v6 }
  0xcd   :  { %v80_v8 = vpop.f32.mrf.mxu0 }
  0xcf   :  { %v103_v9 = vpop.f32.mrf.mxu0 }

</bundles_post_ra>
